<compile_context>
chip_gen: v7x
topology: tpu7x:2x2x1
jax: 0.10.0
libtpu: 0.0.40
codegen_flags: <defaults>
</compile_context>

<pallas_src>
import functools

import jax
import jax.numpy as jnp
from jax import lax
from jax.experimental import pallas as pl
from jax.experimental.pallas import tpu as pltpu


def _expert_kernel(x_ref, w1_ref, w3_ref, w2_ref, o_ref, acc_ref):
    # x_ref:   (tm, hidden)
    # w1_ref:  (tn, hidden)   slice of W1 [ffn, hidden]
    # w3_ref:  (tn, hidden)   slice of W3 [ffn, hidden]
    # w2_ref:  (hidden, tn)   slice of W2 [hidden, ffn]
    # o_ref:   (tm, hidden)
    # acc_ref: (tm, hidden) f32 resident accumulator
    k = pl.program_id(1)

    @pl.when(k == 0)
    def _():
        acc_ref[...] = jnp.zeros_like(acc_ref)

    x = x_ref[...]
    # Contract on dim 1 of both operands (== x @ W.T) so weights stay in the
    # nn.Linear [out, in] layout and no transpose is ever materialized.
    dn = (((1,), (1,)), ((), ()))
    h1 = lax.dot_general(x, w1_ref[...], dn, preferred_element_type=jnp.float32)
    h3 = lax.dot_general(x, w3_ref[...], dn, preferred_element_type=jnp.float32)
    gated = (h1 * jax.nn.sigmoid(h1)) * h3                      # silu(h1) * h3
    acc_ref[...] += lax.dot_general(gated.astype(x.dtype), w2_ref[...], dn,
                                    preferred_element_type=jnp.float32)

    @pl.when(k == pl.num_programs(1) - 1)
    def _():
        o_ref[...] = acc_ref[...].astype(o_ref.dtype)


def _default_tile(dim, pref, align):
    """Largest tile <= pref that is `align`-aligned, or the full dim if small."""
    if dim <= pref:
        return dim
    return max((pref // align) * align, align)


@functools.partial(jax.jit, static_argnames=("tm", "tn", "vmem_limit_bytes"))
def mixtral_expert_forward(x, w1, w2, w3, *, tm=None, tn=None,
                           vmem_limit_bytes=48 * 1024 * 1024):
    """x: [tokens, hidden]; w1, w3: [ffn, hidden]; w2: [hidden, ffn]."""
    tokens, hidden = x.shape
    ffn = w1.shape[0]
    assert w1.shape == (ffn, hidden)
    assert w3.shape == (ffn, hidden)
    assert w2.shape == (hidden, ffn)

    # Token tile: bounded so x-tile + accumulator stay in VMEM budget; 8-aligned
    # (sublane). ffn tile: 128-aligned (lane dim of the W2 block), bounded so
    # double-buffered weight tiles fit v7x's 64 MiB VMEM as well as v5e/v6e.
    if tm is None:
        tm = _default_tile(tokens, 256, 8)
    if tn is None:
        tn = _default_tile(ffn, 512, 128)

    grid = (pl.cdiv(tokens, tm), pl.cdiv(ffn, tn))

    def nbytes(a):
        return a.size * a.dtype.itemsize

    cost = pl.CostEstimate(
        flops=6 * tokens * hidden * ffn,
        transcendentals=tokens * ffn,
        bytes_accessed=nbytes(w1) + nbytes(w2) + nbytes(w3) + 2 * nbytes(x),
    )

    return pl.pallas_call(
        _expert_kernel,
        out_shape=jax.ShapeDtypeStruct((tokens, hidden), x.dtype),
        grid_spec=pltpu.PrefetchScalarGridSpec(
            num_scalar_prefetch=0,
            grid=grid,
            in_specs=[
                pl.BlockSpec((tm, hidden), lambda i, k: (i, 0)),   # x tile
                pl.BlockSpec((tn, hidden), lambda i, k: (k, 0)),   # W1 ffn-slice
                pl.BlockSpec((tn, hidden), lambda i, k: (k, 0)),   # W3 ffn-slice
                pl.BlockSpec((hidden, tn), lambda i, k: (0, k)),   # W2 ffn-slice
            ],
            out_specs=pl.BlockSpec((tm, hidden), lambda i, k: (i, 0)),
            scratch_shapes=[pltpu.VMEM((tm, hidden), jnp.float32)],
        ),
        compiler_params=pltpu.CompilerParams(
            dimension_semantics=("parallel", "arbitrary"),
            vmem_limit_bytes=vmem_limit_bytes,
        ),
        cost_estimate=cost,
    )(x, w1, w3, w2)


def _reference(x, w1, w2, w3):
    h1 = x @ w1.T
    h3 = x @ w3.T
    return ((h1 * jax.nn.sigmoid(h1)) * h3) @ w2.T


def _make_inputs(key, tokens, hidden, ffn, dtype=jnp.float32):
    kx, k1, k2, k3 = jax.random.split(key, 4)
    x = jax.random.normal(kx, (tokens, hidden), dtype=dtype)
    # nn.Linear weight layout: [out_features, in_features]
    w1 = jax.random.normal(k1, (ffn, hidden), dtype=dtype) * 0.05
    w2 = jax.random.normal(k2, (hidden, ffn), dtype=dtype) * 0.05
    w3 = jax.random.normal(k3, (ffn, hidden), dtype=dtype) * 0.05
    return x, w1, w2, w3


if __name__ == "__main__":
    key = jax.random.PRNGKey(0)
    k_a, k_b = jax.random.split(key)

    # Test 1: toy Mixtral-expert shapes (single tile on both grid axes).
    x, w1, w2, w3 = _make_inputs(k_a, tokens=8, hidden=32, ffn=64)
    out = jax.block_until_ready(mixtral_expert_forward(x, w1, w2, w3))
    ref = _reference(x, w1, w2, w3)
    assert out.shape == (8, 32)
    assert jnp.allclose(out, ref, atol=1e-4, rtol=1e-4), "mismatch vs reference (test 1)"

    # Test 2: exercises both grid axes (token tiling + ffn reduction/accumulate).
    x, w1, w2, w3 = _make_inputs(k_b, tokens=16, hidden=128, ffn=256)
    out = jax.block_until_ready(
        mixtral_expert_forward(x, w1, w2, w3, tm=8, tn=128))
    ref = _reference(x, w1, w2, w3)
    assert out.shape == (16, 128)
    assert jnp.allclose(out, ref, atol=1e-4, rtol=1e-4), "mismatch vs reference (test 2)"

    # TODO(synk): the UntypedStorage flattening / state_dict hooks of
    # MixtralExpertWrapper are host-side memory plumbing with no device-compute
    # equivalent; omitted.
    print("KERNEL_OK")
</pallas_src>

<mosaic_0001>
module attributes {stable_mosaic.version = 11 : i64} {
  func.func @_expert_kernel(%arg0: i32, %arg1: i32, %arg2: memref<8x32xf32, #tpu.memory_space<vmem>>, %arg3: memref<64x32xf32, #tpu.memory_space<vmem>>, %arg4: memref<64x32xf32, #tpu.memory_space<vmem>>, %arg5: memref<32x64xf32, #tpu.memory_space<vmem>>, %arg6: memref<8x32xf32, #tpu.memory_space<vmem>>, %arg7: memref<8x32xf32, #tpu.memory_space<vmem>>) attributes {dimension_semantics = [#tpu.dimension_semantics<parallel>, #tpu.dimension_semantics<arbitrary>], iteration_bounds = array<i64: 1, 1>, scalar_prefetch = 0 : i64, scratch_operands = 1 : i64, tpu.core_type = #tpu.core_type<tc>, window_params = [{transform_indices = @transform_0, window_bounds = array<i64: 8, 32>}, {transform_indices = @transform_1, window_bounds = array<i64: 64, 32>}, {transform_indices = @transform_2, window_bounds = array<i64: 64, 32>}, {transform_indices = @transform_3, window_bounds = array<i64: 32, 64>}, {transform_indices = @transform_4, window_bounds = array<i64: 8, 32>}]} {
    %c0_i32 = arith.constant 0 : i32
    %0 = arith.cmpi eq, %arg1, %c0_i32 : i32
    %1 = arith.extui %0 : i1 to i32
    %c0_i32_0 = arith.constant 0 : i32
    %2 = arith.cmpi ne, %1, %c0_i32_0 : i32
    scf.if %2 {
      %cst_17 = arith.constant 0.000000e+00 : f32
      %23 = vector.broadcast %cst_17 : f32 to vector<8x32xf32>
      %c0_18 = arith.constant 0 : index
      %c0_19 = arith.constant 0 : index
      %24 = vector.load %arg7[%c0_18, %c0_19] : memref<8x32xf32, #tpu.memory_space<vmem>>, vector<8x32xf32>
      tpu.vector_store %arg7[%c0_18, %c0_19], %23 {strides = array<i32>} : memref<8x32xf32, #tpu.memory_space<vmem>>, vector<8x32xf32>,
    } else {
    }
    %c0 = arith.constant 0 : index
    %c0_1 = arith.constant 0 : index
    %3 = vector.load %arg2[%c0, %c0_1] : memref<8x32xf32, #tpu.memory_space<vmem>>, vector<8x32xf32>
    %c0_2 = arith.constant 0 : index
    %c0_3 = arith.constant 0 : index
    %4 = vector.load %arg3[%c0_2, %c0_3] : memref<64x32xf32, #tpu.memory_space<vmem>>, vector<64x32xf32>
    %cst = arith.constant dense<0.000000e+00> : vector<8x64xf32>
    %5 = tpu.matmul %3, %4, %cst {dimension_numbers = #tpu.dot_dimension_numbers<[1], [1], [0], [0], [0, 0, 1, 0], [], []>} : vector<8x32xf32>, vector<64x32xf32>, vector<8x64xf32> -> vector<8x64xf32>
    %c0_4 = arith.constant 0 : index
    %c0_5 = arith.constant 0 : index
    %6 = vector.load %arg4[%c0_4, %c0_5] : memref<64x32xf32, #tpu.memory_space<vmem>>, vector<64x32xf32>
    %cst_6 = arith.constant dense<0.000000e+00> : vector<8x64xf32>
    %7 = tpu.matmul %3, %6, %cst_6 {dimension_numbers = #tpu.dot_dimension_numbers<[1], [1], [0], [0], [0, 0, 1, 0], [], []>} : vector<8x32xf32>, vector<64x32xf32>, vector<8x64xf32> -> vector<8x64xf32>
    %8 = arith.negf %5 : vector<8x64xf32>
    %9 = math.exp %8 : vector<8x64xf32>
    %cst_7 = arith.constant 1.000000e+00 : f32
    %10 = vector.broadcast %cst_7 : f32 to vector<8x64xf32>
    %11 = arith.addf %10, %9 : vector<8x64xf32>
    %12 = arith.divf %10, %11 : vector<8x64xf32>
    %13 = arith.mulf %5, %12 : vector<8x64xf32>
    %14 = arith.mulf %13, %7 : vector<8x64xf32>
    %c0_8 = arith.constant 0 : index
    %c0_9 = arith.constant 0 : index
    %15 = vector.load %arg7[%c0_8, %c0_9] : memref<8x32xf32, #tpu.memory_space<vmem>>, vector<8x32xf32>
    %c0_10 = arith.constant 0 : index
    %c0_11 = arith.constant 0 : index
    %16 = vector.load %arg5[%c0_10, %c0_11] : memref<32x64xf32, #tpu.memory_space<vmem>>, vector<32x64xf32>
    %cst_12 = arith.constant dense<0.000000e+00> : vector<8x32xf32>
    %17 = tpu.matmul %14, %16, %cst_12 {dimension_numbers = #tpu.dot_dimension_numbers<[1], [1], [0], [0], [0, 0, 1, 0], [], []>} : vector<8x64xf32>, vector<32x64xf32>, vector<8x32xf32> -> vector<8x32xf32>
    %18 = arith.addf %15, %17 : vector<8x32xf32>
    %c0_13 = arith.constant 0 : index
    %c0_14 = arith.constant 0 : index
    %19 = vector.load %arg7[%c0_13, %c0_14] : memref<8x32xf32, #tpu.memory_space<vmem>>, vector<8x32xf32>
    tpu.vector_store %arg7[%c0_13, %c0_14], %18 {strides = array<i32>} : memref<8x32xf32, #tpu.memory_space<vmem>>, vector<8x32xf32>,
    %c0_i32_15 = arith.constant 0 : i32
    %20 = arith.cmpi eq, %arg1, %c0_i32_15 : i32
    %21 = arith.extui %20 : i1 to i32
    %c0_i32_16 = arith.constant 0 : i32
    %22 = arith.cmpi ne, %21, %c0_i32_16 : i32
    scf.if %22 {
      %c0_17 = arith.constant 0 : index
      %c0_18 = arith.constant 0 : index
      %23 = vector.load %arg7[%c0_17, %c0_18] : memref<8x32xf32, #tpu.memory_space<vmem>>, vector<8x32xf32>
      %c0_19 = arith.constant 0 : index
      %c0_20 = arith.constant 0 : index
      %24 = vector.load %arg6[%c0_19, %c0_20] : memref<8x32xf32, #tpu.memory_space<vmem>>, vector<8x32xf32>
      tpu.vector_store %arg6[%c0_19, %c0_20], %23 {strides = array<i32>} : memref<8x32xf32, #tpu.memory_space<vmem>>, vector<8x32xf32>,
    } else {
    }
    return
  }
  func.func @transform_0(%arg0: i32, %arg1: i32) -> (i32, i32) {
    %c0_i32 = arith.constant 0 : i32
    %c0_i32_0 = arith.constant 0 : i32
    return %arg0, %c0_i32 : i32, i32
  }
  func.func @transform_1(%arg0: i32, %arg1: i32) -> (i32, i32) {
    %c0_i32 = arith.constant 0 : i32
    %c0_i32_0 = arith.constant 0 : i32
    return %arg1, %c0_i32 : i32, i32
  }
  func.func @transform_2(%arg0: i32, %arg1: i32) -> (i32, i32) {
    %c0_i32 = arith.constant 0 : i32
    %c0_i32_0 = arith.constant 0 : i32
    return %arg1, %c0_i32 : i32, i32
  }
  func.func @transform_3(%arg0: i32, %arg1: i32) -> (i32, i32) {
    %c0_i32 = arith.constant 0 : i32
    %c0_i32_0 = arith.constant 0 : i32
    return %c0_i32, %arg1 : i32, i32
  }
  func.func @transform_4(%arg0: i32, %arg1: i32) -> (i32, i32) {
    %c0_i32 = arith.constant 0 : i32
    %c0_i32_0 = arith.constant 0 : i32
    return %arg0, %c0_i32 : i32, i32
  }
}

</mosaic_0001>

<bundles_post_ra>
// kernel: mixtral_expert_forward.1
= control target key start
LH: loop header
LB: loop body
LE: loop exit
PB: predicated region body
PF: predicated region fallthrough
CT: control target
= control target key end

     0   :  { %vm22_vm0 = vcmask 261120   ;;  %v521_v2 = vmov 0.0|0.0   ;;  %v522_v5 = vmov 0.0   ;;  %vm523_vm2 = vmmov 0   ;;  %s658_s0 = inlined_call_operand.vmem [shape: f32[8,32], index: 0, kind: input, shape index: {}]   ;;  %s659_s1 = inlined_call_operand.vmem [shape: f32[64,32], index: 1, kind: input, shape index: {}]   ;;  %s660_s2 = inlined_call_operand.vmem [shape: f32[64,32], index: 2, kind: input, shape index: {}]   ;;  %s661_s3 = inlined_call_operand.vmem [shape: f32[32,64], index: 3, kind: input, shape index: {}]   ;;  %s662_s4 = inlined_call_operand.hbm [shape: f32[8,32], index: 4, kind: output, shape index: {}]  }
   0x1   :  { %v25_v0 = vld [vmem:[%s659_s1] sm:$0xff]  ;;  %v26_v1 = vld [vmem:[%s659_s1 + $0x8] sm:$0xff]  ;;  %449 = vmatprep.subr.bf16.mxu0 %v521_v2  ;;  %vm558_vm1 = vmpackc.low %vm22_vm0, %vm22_vm0  ;;  %465 = vmatprep.subr.bf16.mxu1 %v521_v2  ;;  %23 = vst.msk [vmem:[#allocation2] sm:$0xff] %vm22_vm0, %v522_v5 }
   0x2   :  { %v450_v3 = vpack.c.bf16 %v26_v1, %v25_v0  ;;  %416 = vmatprep.mubr.msk.f32.mxu0 %vm523_vm2, %v522_v5  ;;  %435 = vmatprep.mubr.msk.f32.mxu1 %vm523_vm2, %v522_v5  ;;  %v131_v6 = vld [vmem:[%s660_s2] sm:$0xff]  ;;  %v132_v7 = vld [vmem:[%s660_s2 + $0x8] sm:$0xff]  ;;  %v27_v8 = vld [vmem:[%s659_s1 + $0x10] sm:$0xff] }
   0x3   :  { %v28_v9 = vld [vmem:[%s659_s1 + $0x18] sm:$0xff]  ;;  %v466_v10 = vpack.c.bf16 %v132_v7, %v131_v6 }
   0x4   :  { %452 = vmatpush3.bf16.xpose.msk.msra.mxu0 %vm558_vm1, %v450_v3 }
   0x5   :  { %453 = vmatprep.subr.bf16.mxu0 %v521_v2  ;;  %468 = vmatpush3.bf16.xpose.msk.msra.mxu1 %vm558_vm1, %v466_v10 }
   0x6   :  { %9 = vsyncpa [#allocation4], 0  ;;  %v454_v11 = vpack.c.bf16 %v28_v9, %v27_v8  ;;  %469 = vmatprep.subr.bf16.mxu1 %v521_v2  ;;  %v133_v12 = vld [vmem:[%s660_s2 + $0x10] sm:$0xff]  ;;  %v134_v13 = vld [vmem:[%s660_s2 + $0x18] sm:$0xff]  ;;  %vm246_vm3 = vcmask 523264  }
   0x7   :  { %v470_v14 = vpack.c.bf16 %v134_v13, %v133_v12  ;;  %v29_v15 = vld [vmem:[%s659_s1 + $0x20] sm:$0xff]  ;;  %v30_v16 = vld [vmem:[%s659_s1 + $0x28] sm:$0xff]  ;;  %v31_v21 = vld [vmem:[%s659_s1 + $0x30] sm:$0xff] }
   0x8   :  { %v458_v17 = vpack.c.bf16 %v30_v16, %v29_v15  ;;  %v135_v18 = vld [vmem:[%s660_s2 + $0x20] sm:$0xff]  ;;  %v136_v19 = vld [vmem:[%s660_s2 + $0x28] sm:$0xff]  ;;  %v32_v22 = vld [vmem:[%s659_s1 + $0x38] sm:$0xff] }
   0x9   :  { %v474_v20 = vpack.c.bf16 %v136_v19, %v135_v18  ;;  %v462_v23 = vpack.c.bf16 %v32_v22, %v31_v21  ;;  %v137_v24 = vld [vmem:[%s660_s2 + $0x30] sm:$0xff]  ;;  %v138_v25 = vld [vmem:[%s660_s2 + $0x38] sm:$0xff]  ;;  %v24_v27 = vld [vmem:[%s658_s0] sm:$0xff] }
   0xa   :  { %v478_v26 = vpack.c.bf16 %v138_v25, %v137_v24  ;;  %v242_v28 = vld [vmem:[%s661_s3] sm:$0xff]  ;;  %v243_v29 = vld [vmem:[%s661_s3 + $0x8] sm:$0xff]  ;;  %vm483_vm4 = vmpackc.low %vm246_vm3, %vm246_vm3 }
   0xb   :  { %v482_v30 = vpack.c.bf16 %v243_v29, %v242_v28  ;;  %v244_v31 = vld [vmem:[%s661_s3 + $0x10] sm:$0xff]  ;;  %v245_v32 = vld [vmem:[%s661_s3 + $0x18] sm:$0xff]  ;;  %v241_v44 = vld [vmem:[#allocation2] sm:$0xff]  ;;  %s524_s3 = smov [#allocation3]  }
   0xc   :  { %456 = vmatpush3.bf16.xpose.msk.msra.mxu0 %vm558_vm1, %v454_v11  ;;  %v486_v33 = vpack.c.bf16 %v245_v32, %v244_v31  ;;  %s345_s28 = sshll.u32 %s524_s3, 4  ;;  %s346_s28 = int_to_ptr.vmem [resolvable:$true] %s345_s28 }
   0xd   :  { %457 = vmatprep.subr.bf16.mxu0 %v521_v2  ;;  %472 = vmatpush3.bf16.xpose.msk.msra.mxu1 %vm558_vm1, %v470_v14  ;;  %s497_s29 = scalar_lea.vmem %s346_s28, 128  ;;  %p502_p1 = scmp.lt.s32.totalorder %s346_s28, %s346_s28 }
   0xe   :  { %473 = vmatprep.subr.bf16.mxu1 %v521_v2  ;;  %p498_p0 = scmp.ne.s32.totalorder %s346_s28, %s497_s29  ;;  %p503_p2 = scmp.lt.s32.totalorder %s497_s29, %s497_s29 }
  0x10   :  { %p504_p3 = por %p503_p2, %p502_p1 }
  0x12   :  { %p505_p4 = pnand %p504_p3, %p498_p0 }
  0x14   :  { %460 = vmatpush3.bf16.xpose.msk.msra.mxu0 %vm558_vm1, %v458_v17 }
  0x15   :  { %461 = vmatprep.subr.bf16.mxu0 %v521_v2  ;;  %476 = vmatpush3.bf16.xpose.msk.msra.mxu1 %vm558_vm1, %v474_v20 }
  0x16   :  { %477 = vmatprep.subr.bf16.mxu1 %v521_v2 }
  0x1c   :  { %464 = vmatpush3.bf16.xpose.msk.msra.mxu0 %vm558_vm1, %v462_v23 }
  0x1d   :  { %481 = vmatprep.subr.bf16.mxu0 %v521_v2  ;;  %480 = vmatpush3.bf16.xpose.msk.msra.mxu1 %vm558_vm1, %v478_v26 }
  0x23   :  { %417 = vmatmul.mubr.msk.f32.vlgmr.msra.gmra.mrb[0].mxu0 %vm22_vm0, %v24_v27 }
  0x24   :  { %446 = vmatprep.mubr.msk.f32.mxu0 %vm523_vm2, %v522_v5  ;;  %436 = vmatmul.mubr.msk.f32.vlgmr.msra.gmra.mrb[0].mxu1 %vm22_vm0, %v24_v27 }
  0x25   :  { %484 = vmatpush3.bf16.xpose.msk.msra.mxu0 %vm483_vm4, %v482_v30 }
  0x26   :  { %485 = vmatprep.subr.bf16.mxu0 %v521_v2 }
  0x2d   :  { %488 = vmatpush3.bf16.xpose.msk.msra.mxu0 %vm483_vm4, %v486_v33 }
  0xf6   :  { %v127_v34 = vpop.f32.mrb[0].mxu0 }
  0xf7   :  { %v371_v35 = vmul.f32 -1.442695, %v127_v34  ;;  %v418_v36 = vpop.f32.mrb[1].mxu0  ;;  %v229_v37 = vpop.f32.mrb[0].mxu1 }
  0xf8   :  { %v437_v38 = vpop.f32.mrb[1].mxu1 }
  0xf9   :  { %493 = vpow2.f32 %v371_v35 }
 0x103   :  { %v494_v39 = vpop.eup %493 }
 0x104   :  { %v236_v40 = vadd.f32 1.0, %v494_v39 }
 0x106   :  { %495 = vrcp.f32 %v236_v40 }
 0x110   :  { %v496_v41 = vpop.eup %495 }
 0x111   :  { %v239_v42 = vmul.f32 %v496_v41, %v127_v34 }
 0x113   :  { %v240_v43 = vmul.f32 %v239_v42, %v229_v37 }
 0x115   :  { %447 = vmatmul.mubr.msk.f32.vlgmr.msra.gmra.mrb[2].mxu0 %vm246_vm3, %v240_v43 }
 0x1e8   :  { %v328_v45 = vpop.f32.mrb[2].mxu0 }
 0x1e9   :  { %v332_v46 = vadd.f32 %v328_v45, %v241_v44  ;;  %v448_v47 = vpop.f32.mrb[3].mxu0 }
 0x1eb   :  { %333 = vst.msk [vmem:[#allocation2] sm:$0xff] %vm22_vm0, %v332_v46 }
 0x1f2   :  { %v337_v48 = vld [vmem:[#allocation2] sm:$0xff] }
 0x1f3   :  { %338 = vst.msk [vmem:[#allocation3] sm:$0xff] %vm22_vm0, %v337_v48 }
 0x1f4   :  { %508 = shalt.err (!%p505_p4)
}
 0x1f5   :  { %s509_s6 = scalar_lea.hbm %s662_s4, 128 }
 0x1f6   :  { %p510_p5 = scmp.ne.s32.totalorder %s662_s4, %s509_s6  ;;  %p513_p6 = scmp.lt.u32.totalorder %s509_s6, %s662_s4 }
 0x1f8   :  { %p515_p7 = pnand %p513_p6, %p510_p5 }
 0x1fa   :  { %518 = shalt.err (!%p515_p7)
}
 0x1fb   :  { %348 = dma.vmem_to_hbm [thread:$0]  %s346_s28, 128, %s662_s4, [#allocation4]  }
 0x1fc   :  { %519 = dma.done.wait [#allocation4], 128  }
 0x1fd   :  { %520 = vsyncadd [#allocation4], 4294967168 }
 0x1fe   :  { %352 = vsyncpa [#allocation4], 1 }

</bundles_post_ra>
